<compile_context>
chip_gen: v7x
topology: tpu7x:2x2x1
jax: 0.10.0
libtpu: 0.0.40
codegen_flags: <defaults>
</compile_context>

<pallas_src>
import functools
import math

import jax
import jax.numpy as jnp
from jax.experimental import pallas as pl
from jax.experimental.pallas import tpu as pltpu

# ----------------------------- config ---------------------------------------
# Scaled-down synthetic BERT. HIDDEN is kept at 768 so the classifier head
# matches the module exactly (D_in, H, D_out) = (768, 50, 2).
VOCAB = 512
MAX_POS = 64
HIDDEN = 768
NUM_HEADS = 12
HEAD_DIM = HIDDEN // NUM_HEADS
INTERMEDIATE = 3072
NUM_LAYERS = 2   # TODO(synk): bert-base-uncased has 12 layers; 2 used for the small synthetic model
LN_EPS = 1e-12
CLS_H = 50
CLS_OUT = 2
LANE = 128


def _pick_tile(dim, candidates):
    """Largest candidate tile that evenly divides dim, else the full dim."""
    for t in candidates:
        if dim % t == 0:
            return t
    return dim


# ----------------------- tiled linear (+bias, +act) --------------------------
def _linear_kernel(x_ref, w_ref, b_ref, o_ref, acc_ref, *, act):
    # x: [tm, tk] f32, w: [tk, tn] bf16, b: [1, tn] f32 -> o: [tm, tn] f32
    @pl.when(pl.program_id(2) == 0)
    def _():
        acc_ref[...] = jnp.zeros_like(acc_ref)

    acc_ref[...] += jnp.dot(
        x_ref[...].astype(jnp.bfloat16), w_ref[...],
        preferred_element_type=jnp.float32)

    @pl.when(pl.program_id(2) == pl.num_programs(2) - 1)
    def _():
        y = acc_ref[...] + b_ref[...]
        if act == "relu":
            y = jnp.maximum(y, 0.0)
        elif act == "gelu":
            # TODO(synk): HF BERT uses exact erf-GELU; tanh approximation used here.
            y = jax.nn.gelu(y, approximate=True)
        o_ref[...] = y


def linear(x, w, b, act="none"):
    M, K = x.shape
    _, N = w.shape
    tm = _pick_tile(M, (256, 128, 64, 32, 16, 8))
    tn = _pick_tile(N, (512, 384, 256, 128))
    tk = _pick_tile(K, (512, 384, 256, 128))
    kern = functools.partial(_linear_kernel, act=act)
    return pl.pallas_call(
        kern,
        out_shape=jax.ShapeDtypeStruct((M, N), jnp.float32),
        grid=(M // tm, N // tn, K // tk),
        in_specs=[
            pl.BlockSpec((tm, tk), lambda i, j, k: (i, k)),
            pl.BlockSpec((tk, tn), lambda i, j, k: (k, j)),
            pl.BlockSpec((1, tn), lambda i, j, k: (0, j)),
        ],
        out_specs=pl.BlockSpec((tm, tn), lambda i, j, k: (i, j)),
        scratch_shapes=[pltpu.VMEM((tm, tn), jnp.float32)],
        compiler_params=pltpu.CompilerParams(
            dimension_semantics=("parallel", "parallel", "arbitrary")),
    )(x, w, b.reshape(1, N))


# ---------------------- layernorm / residual + layernorm --------------------
def _ln_math(x, g, b):
    mean = jnp.mean(x, axis=-1, keepdims=True)
    xc = x - mean
    var = jnp.mean(xc * xc, axis=-1, keepdims=True)   # biased variance (matches nn.LayerNorm)
    return xc * jax.lax.rsqrt(var + LN_EPS) * g + b


def _layernorm_kernel(x_ref, g_ref, b_ref, o_ref):
    o_ref[...] = _ln_math(x_ref[...], g_ref[...], b_ref[...])


def _add_layernorm_kernel(x_ref, r_ref, g_ref, b_ref, o_ref):
    o_ref[...] = _ln_math(x_ref[...] + r_ref[...], g_ref[...], b_ref[...])


def layernorm(x, g, b, residual=None):
    M, D = x.shape
    tm = _pick_tile(M, (256, 128, 64, 32, 16, 8))
    row_spec = pl.BlockSpec((tm, D), lambda i: (i, 0))
    vec_spec = pl.BlockSpec((1, D), lambda i: (0, 0))
    if residual is None:
        kern, ins, in_specs = _layernorm_kernel, [x], [row_spec]
    else:
        kern, ins, in_specs = _add_layernorm_kernel, [x, residual], [row_spec, row_spec]
    ins += [g.reshape(1, D), b.reshape(1, D)]
    in_specs += [vec_spec, vec_spec]
    return pl.pallas_call(
        kern,
        out_shape=jax.ShapeDtypeStruct((M, D), jnp.float32),
        grid=(M // tm,),
        in_specs=in_specs,
        out_specs=row_spec,
        compiler_params=pltpu.CompilerParams(dimension_semantics=("parallel",)),
    )(*ins)


# ------------------------------ attention ------------------------------------
def _attn_kernel(q_ref, k_ref, v_ref, bias_ref, o_ref):
    # one batch element per program; all heads batched: q/k/v [H, S, Dh]
    scale = 1.0 / math.sqrt(HEAD_DIM)
    q = (q_ref[0] * scale).astype(jnp.bfloat16)       # scale q once (S x Dh) not scores (S x S)
    k = k_ref[0].astype(jnp.bfloat16)
    v = v_ref[0].astype(jnp.bfloat16)
    bias = bias_ref[0]                                 # [1, S] additive mask
    s = jnp.einsum("hqd,hkd->hqk", q, k, preferred_element_type=jnp.float32)
    s = s + bias                                       # broadcast over heads / query rows
    s = s - jnp.max(s, axis=-1, keepdims=True)
    p = jnp.exp(s)
    p = p * pl.reciprocal(jnp.sum(p, axis=-1, keepdims=True), approx=True)
    o_ref[0] = jnp.einsum("hqk,hkd->hqd", p.astype(jnp.bfloat16), v,
                          preferred_element_type=jnp.float32)


def attention(q, k, v, bias):
    B, H, S, Dh = q.shape
    qkv_spec = pl.BlockSpec((1, H, S, Dh), lambda b: (b, 0, 0, 0))
    return pl.pallas_call(
        _attn_kernel,
        out_shape=jax.ShapeDtypeStruct((B, H, S, Dh), jnp.float32),
        grid=(B,),
        in_specs=[qkv_spec, qkv_spec, qkv_spec,
                  pl.BlockSpec((1, 1, S), lambda b: (b, 0, 0))],
        out_specs=qkv_spec,
        compiler_params=pltpu.CompilerParams(dimension_semantics=("parallel",)),
    )(q, k, v, bias)


# ----------------------------- parameters -----------------------------------
def init_params(key):
    scale = 0.02

    def normal(k, shape, dtype=jnp.bfloat16):
        return (scale * jax.random.normal(k, shape, dtype=jnp.float32)).astype(dtype)

    keys = iter(jax.random.split(key, 8 + NUM_LAYERS * 8))
    p = {
        "word_emb": normal(next(keys), (VOCAB, HIDDEN), jnp.float32),
        "pos_emb": normal(next(keys), (MAX_POS, HIDDEN), jnp.float32),
        "type_emb": normal(next(keys), (2, HIDDEN), jnp.float32),
        "emb_ln_g": jnp.ones((HIDDEN,), jnp.float32),
        "emb_ln_b": jnp.zeros((HIDDEN,), jnp.float32),
        "layers": [],
    }

    # classifier head: Linear(768,50)->ReLU->Linear(50,2), padded to 128 lanes
    w1 = normal(next(keys), (HIDDEN, CLS_H), jnp.float32)
    p["cls_w1"] = jnp.zeros((HIDDEN, LANE), jnp.float32).at[:, :CLS_H].set(w1).astype(jnp.bfloat16)
    p["cls_b1"] = jnp.zeros((LANE,), jnp.float32)
    w2 = normal(next(keys), (CLS_H, CLS_OUT), jnp.float32)
    p["cls_w2"] = jnp.zeros((LANE, LANE), jnp.float32).at[:CLS_H, :CLS_OUT].set(w2).astype(jnp.bfloat16)
    p["cls_b2"] = jnp.zeros((LANE,), jnp.float32)

    for _ in range(NUM_LAYERS):
        layer = {
            # fused [Wq | Wk | Wv] along the output axis -> single projection matmul
            "qkv_w": normal(next(keys), (HIDDEN, 3 * HIDDEN)),
            "qkv_b": jnp.zeros((3 * HIDDEN,), jnp.float32),
            "ao_w": normal(next(keys), (HIDDEN, HIDDEN)),
            "ao_b": jnp.zeros((HIDDEN,), jnp.float32),
            "attn_ln_g": jnp.ones((HIDDEN,), jnp.float32),
            "attn_ln_b": jnp.zeros((HIDDEN,), jnp.float32),
            "ffn_w1": normal(next(keys), (HIDDEN, INTERMEDIATE)),
            "ffn_b1": jnp.zeros((INTERMEDIATE,), jnp.float32),
            "ffn_w2": normal(next(keys), (INTERMEDIATE, HIDDEN)),
            "ffn_b2": jnp.zeros((HIDDEN,), jnp.float32),
            "ffn_ln_g": jnp.ones((HIDDEN,), jnp.float32),
            "ffn_ln_b": jnp.zeros((HIDDEN,), jnp.float32),
        }
        p["layers"].append(layer)
    return p


# ----------------------------- forward pass ----------------------------------
def bert_classifier_forward(params, input_ids, attention_mask):
    B, S = input_ids.shape

    # --- embeddings (gather is plain-JAX glue), token_type_ids default to 0 ---
    x = (params["word_emb"][input_ids]
         + params["pos_emb"][jnp.arange(S)][None, :, :]
         + params["type_emb"][0][None, None, :])
    x = x.reshape(B * S, HIDDEN)
    x = layernorm(x, params["emb_ln_g"], params["emb_ln_b"])

    # HF-style additive mask: 0 where attended, -10000 where masked.
    bias = ((1.0 - attention_mask.astype(jnp.float32)) * -10000.0).reshape(B, 1, S)

    def split_heads(t):
        # [B*S, HIDDEN] -> [B, H, S, Dh]
        # TODO(synk): at production shapes fold this transpose into the QKV output
        # BlockSpec / attention index_map; at B*S=16 the XLA copy is negligible.
        return t.reshape(B, S, NUM_HEADS, HEAD_DIM).transpose(0, 2, 1, 3)

    for layer in params["layers"]:
        # --- self attention (fused QKV projection) ---
        qkv = linear(x, layer["qkv_w"], layer["qkv_b"])
        q = split_heads(qkv[:, 0 * HIDDEN:1 * HIDDEN])
        k = split_heads(qkv[:, 1 * HIDDEN:2 * HIDDEN])
        v = split_heads(qkv[:, 2 * HIDDEN:3 * HIDDEN])
        ctx = attention(q, k, v, bias)
        ctx = ctx.transpose(0, 2, 1, 3).reshape(B * S, HIDDEN)
        attn_out = linear(ctx, layer["ao_w"], layer["ao_b"])
        x = layernorm(attn_out, layer["attn_ln_g"], layer["attn_ln_b"], residual=x)

        # --- feed-forward ---
        h = linear(x, layer["ffn_w1"], layer["ffn_b1"], act="gelu")
        h = linear(h, layer["ffn_w2"], layer["ffn_b2"])
        x = layernorm(h, layer["ffn_ln_g"], layer["ffn_ln_b"], residual=x)

    last_hidden_state = x.reshape(B, S, HIDDEN)
    cls_tok = last_hidden_state[:, 0, :]                       # outputs[0][:, 0, :]

    # classifier: Linear(768, 50) -> ReLU -> Linear(50, 2), lane-padded to 128
    h = linear(cls_tok, params["cls_w1"], params["cls_b1"], act="relu")
    logits = linear(h, params["cls_w2"], params["cls_b2"])[:, :CLS_OUT]
    return logits


# ----------------------------- main ------------------------------------------
if __name__ == "__main__":
    B, S = 2, 8
    params = init_params(jax.random.PRNGKey(0))

    kid = jax.random.PRNGKey(1)
    input_ids = jax.random.randint(kid, (B, S), 0, VOCAB, dtype=jnp.int32)
    attention_mask = jnp.ones((B, S), dtype=jnp.int32)
    attention_mask = attention_mask.at[1, 6:].set(0)   # pad the tail of example 1

    logits = bert_classifier_forward(params, input_ids, attention_mask)
    logits = jax.block_until_ready(logits)

    assert logits.shape == (B, CLS_OUT)
    assert logits.dtype == jnp.float32
    assert bool(jnp.all(jnp.isfinite(logits)))
    print("KERNEL_OK")
</pallas_src>

<mosaic_0001>
module attributes {stable_mosaic.version = 11 : i64} {
  func.func @_layernorm_kernel(%arg0: i32, %arg1: memref<16x768xf32, #tpu.memory_space<vmem>>, %arg2: memref<1x768xf32, #tpu.memory_space<vmem>>, %arg3: memref<1x768xf32, #tpu.memory_space<vmem>>, %arg4: memref<16x768xf32, #tpu.memory_space<vmem>>) attributes {dimension_semantics = [#tpu.dimension_semantics<parallel>], iteration_bounds = array<i64: 1>, scalar_prefetch = 0 : i64, scratch_operands = 0 : i64, tpu.core_type = #tpu.core_type<tc>, window_params = [{transform_indices = @transform_0, window_bounds = array<i64: 16, 768>}, {pipeline_mode = #tpu.pipeline_mode<synchronous>, transform_indices = @transform_1, window_bounds = array<i64: 1, 768>}, {pipeline_mode = #tpu.pipeline_mode<synchronous>, transform_indices = @transform_2, window_bounds = array<i64: 1, 768>}, {transform_indices = @transform_3, window_bounds = array<i64: 16, 768>}]} {
    %c0 = arith.constant 0 : index
    %c0_0 = arith.constant 0 : index
    %0 = vector.load %arg1[%c0, %c0_0] : memref<16x768xf32, #tpu.memory_space<vmem>>, vector<16x768xf32>
    %c0_1 = arith.constant 0 : index
    %c0_2 = arith.constant 0 : index
    %1 = vector.load %arg2[%c0_1, %c0_2] : memref<1x768xf32, #tpu.memory_space<vmem>>, vector<1x768xf32>
    %c0_3 = arith.constant 0 : index
    %c0_4 = arith.constant 0 : index
    %2 = vector.load %arg3[%c0_3, %c0_4] : memref<1x768xf32, #tpu.memory_space<vmem>>, vector<1x768xf32>
    %cst = arith.constant dense<0.000000e+00> : vector<16xf32>
    %3 = vector.multi_reduction <add>, %0, %cst [1] : vector<16x768xf32> to vector<16xf32>
    %4 = vector.shape_cast %3 : vector<16xf32> to vector<16x1xf32>
    %cst_5 = arith.constant 7.680000e+02 : f32
    %5 = vector.broadcast %cst_5 : f32 to vector<16x1xf32>
    %6 = arith.divf %4, %5 : vector<16x1xf32>
    %7 = vector.broadcast %6 : vector<16x1xf32> to vector<16x768xf32>
    %8 = arith.subf %0, %7 : vector<16x768xf32>
    %9 = arith.mulf %8, %8 : vector<16x768xf32>
    %cst_6 = arith.constant dense<0.000000e+00> : vector<16xf32>
    %10 = vector.multi_reduction <add>, %9, %cst_6 [1] : vector<16x768xf32> to vector<16xf32>
    %11 = vector.shape_cast %10 : vector<16xf32> to vector<16x1xf32>
    %cst_7 = arith.constant 7.680000e+02 : f32
    %12 = vector.broadcast %cst_7 : f32 to vector<16x1xf32>
    %13 = arith.divf %11, %12 : vector<16x1xf32>
    %cst_8 = arith.constant 9.99999996E-13 : f32
    %14 = vector.broadcast %cst_8 : f32 to vector<16x1xf32>
    %15 = arith.addf %13, %14 : vector<16x1xf32>
    %16 = math.rsqrt %15 : vector<16x1xf32>
    %17 = vector.broadcast %16 : vector<16x1xf32> to vector<16x768xf32>
    %18 = arith.mulf %8, %17 : vector<16x768xf32>
    %19 = vector.broadcast %1 : vector<1x768xf32> to vector<16x768xf32>
    %20 = arith.mulf %18, %19 : vector<16x768xf32>
    %21 = vector.broadcast %2 : vector<1x768xf32> to vector<16x768xf32>
    %22 = arith.addf %20, %21 : vector<16x768xf32>
    %c0_9 = arith.constant 0 : index
    %c0_10 = arith.constant 0 : index
    %23 = vector.load %arg4[%c0_9, %c0_10] : memref<16x768xf32, #tpu.memory_space<vmem>>, vector<16x768xf32>
    tpu.vector_store %arg4[%c0_9, %c0_10], %22 {strides = array<i32>} : memref<16x768xf32, #tpu.memory_space<vmem>>, vector<16x768xf32>,
    return
  }
  func.func @transform_0(%arg0: i32) -> (i32, i32) {
    %c0_i32 = arith.constant 0 : i32
    %c0_i32_0 = arith.constant 0 : i32
    return %arg0, %c0_i32 : i32, i32
  }
  func.func @transform_1(%arg0: i32) -> (i32, i32) {
    %c0_i32 = arith.constant 0 : i32
    %c0_i32_0 = arith.constant 0 : i32
    %c0_i32_1 = arith.constant 0 : i32
    return %c0_i32, %c0_i32_0 : i32, i32
  }
  func.func @transform_2(%arg0: i32) -> (i32, i32) {
    %c0_i32 = arith.constant 0 : i32
    %c0_i32_0 = arith.constant 0 : i32
    %c0_i32_1 = arith.constant 0 : i32
    return %c0_i32, %c0_i32_0 : i32, i32
  }
  func.func @transform_3(%arg0: i32) -> (i32, i32) {
    %c0_i32 = arith.constant 0 : i32
    %c0_i32_0 = arith.constant 0 : i32
    return %arg0, %c0_i32 : i32, i32
  }
}

</mosaic_0001>

<bundles_post_ra>
// kernel: tpu_custom_call.1
= control target key start
LH: loop header
LB: loop body
LE: loop exit
PB: predicated region body
PF: predicated region fallthrough
CT: control target
= control target key end

     0   :  { %8 = vsyncpa [#allocation3], 0  ;;  %s440_s0 = inlined_call_operand.hbm [shape: f32[16,768], index: 0, kind: input, shape index: {}]   ;;  %s441_s1 = inlined_call_operand.hbm [shape: f32[1,768], index: 1, kind: input, shape index: {}]   ;;  %s442_s2 = inlined_call_operand.vmem [shape: f32[1,768], index: 2, kind: input, shape index: {}]   ;;  %s443_s3 = inlined_call_operand.hbm [shape: f32[16,768], index: 3, kind: output, shape index: {}]  }
   0x1   :  { %9 = vsyncpa [#allocation6], 0 }
   0x2   :  { %10 = vsyncpa [#allocation4], 0  ;;  %s325_s12 = smov [#allocation2]   ;;  %s253_s16 = scalar_lea.hbm %s440_s0, 1536 }
   0x3   :  { %s16_s13 = sshll.u32 %s325_s12, 4  ;;  %p254_p0 = scmp.ne.s32.totalorder %s440_s0, %s253_s16  ;;  %s17_s13 = int_to_ptr.vmem [resolvable:$true] %s16_s13 }
   0x4   :  { %p257_p1 = scmp.lt.u32.totalorder %s253_s16, %s440_s0 }
   0x6   :  { %p259_p2 = pnand %p257_p1, %p254_p0 }
   0x8   :  { %262 = shalt.err (!%p259_p2)
}
   0x9   :  { %s263_s21 = scalar_lea.vmem %s17_s13, 1536  ;;  %p268_p4 = scmp.lt.s32.totalorder %s17_s13, %s17_s13 }
   0xa   :  { %p264_p3 = scmp.ne.s32.totalorder %s17_s13, %s263_s21  ;;  %p269_p5 = scmp.lt.s32.totalorder %s263_s21, %s263_s21 }
   0xc   :  { %p270_p6 = por %p269_p5, %p268_p4 }
   0xe   :  { %p271_p7 = pnand %p270_p6, %p264_p3 }
  0x10   :  { %274 = shalt.err (!%p271_p7)
}
  0x11   :  { %s326_s22 = smov 768   ;;  %s327_s23 = smov 48  }
  0x12   :  { %22 = dma.hbm_to_vmem [thread:$0]  %s440_s0, 1536, %s17_s13, [#allocation3], %s326_s22, %s326_s22, %s327_s23  }
  0x13   :  { %s328_s26 = smov [#allocation5]   ;;  %s275_s30 = scalar_lea.hbm %s441_s1, 96 }
  0x14   :  { %s29_s27 = sshll.u32 %s328_s26, 4  ;;  %p276_p8 = scmp.ne.s32.totalorder %s441_s1, %s275_s30  ;;  %s30_s27 = int_to_ptr.vmem [resolvable:$true] %s29_s27 }
  0x15   :  { %p279_p9 = scmp.lt.u32.totalorder %s275_s30, %s441_s1 }
  0x17   :  { %p281_p10 = pnand %p279_p9, %p276_p8 }
  0x19   :  { %284 = shalt.err (!%p281_p10)
}
  0x1a   :  { %s285_s8 = scalar_lea.vmem %s30_s27, 96  ;;  %p290_p12 = scmp.lt.s32.totalorder %s30_s27, %s30_s27 }
  0x1b   :  { %p286_p11 = scmp.ne.s32.totalorder %s30_s27, %s285_s8  ;;  %p291_p13 = scmp.lt.s32.totalorder %s285_s8, %s285_s8 }
  0x1d   :  { %p292_p0 = por %p291_p13, %p290_p12 }
  0x1f   :  { %p293_p1 = pnand %p292_p0, %p286_p11 }
  0x21   :  { %296 = shalt.err (!%p293_p1)
}
  0x22   :  { %32 = dma.hbm_to_vmem [thread:$0]  %s441_s1, 96, %s30_s27, [#allocation6]  }
  0x23   :  { %319 = dma.done.wait [#allocation3], 1536  }
  0x24   :  { %320 = vsyncadd [#allocation3], 4294965760 }
  0x25   :  { %321 = dma.done.wait [#allocation6], 96  }
  0x26   :  { %322 = vsyncadd [#allocation6], 4294967200  ;;  %v41_v0 = vld [vmem:[#allocation2] sm:$0xff]  ;;  %v42_v1 = vld [vmem:[#allocation2 + $0x8] sm:$0xff]  ;;  %v129_v62 = vlaneseq }
  0x27   :  { %v43_v2 = vld [vmem:[#allocation2 + $0x10] sm:$0xff]  ;;  %v44_v3 = vld [vmem:[#allocation2 + $0x18] sm:$0xff]  ;;  %v55_v4 = vadd.f32 %v42_v1, %v41_v0  ;;  %v49_v7 = vld [vmem:[#allocation2 + $0x40] sm:$0xff] }
  0x28   :  { %v47_v5 = vld [vmem:[#allocation2 + $0x30] sm:$0xff]  ;;  %v48_v6 = vld [vmem:[#allocation2 + $0x38] sm:$0xff]  ;;  %v45_v10 = vld [vmem:[#allocation2 + $0x20] sm:$0xff] }
  0x29   :  { %v56_v8 = vadd.f32 %v55_v4, %v43_v2  ;;  %v62_v9 = vadd.f32 %v48_v6, %v47_v5  ;;  %v50_v11 = vld [vmem:[#allocation2 + $0x48] sm:$0xff]  ;;  %v51_v15 = vld [vmem:[#allocation2 + $0x50] sm:$0xff]  ;;  %v52_v18 = vld [vmem:[#allocation2 + $0x58] sm:$0xff] }
  0x2a   :  { %v46_v14 = vld [vmem:[#allocation2 + $0x28] sm:$0xff] }
  0x2b   :  { %v57_v12 = vadd.f32 %v56_v8, %v44_v3  ;;  %v63_v13 = vadd.f32 %v62_v9, %v49_v7  ;;  %v53_v8 = vld [vmem:[#allocation5] sm:$0x3f] }
  0x2d   :  { %v58_v16 = vadd.f32 %v57_v12, %v45_v10  ;;  %v64_v17 = vadd.f32 %v63_v13, %v50_v11 }
  0x2f   :  { %v59_v19 = vadd.f32 %v58_v16, %v46_v14  ;;  %v65_v20 = vadd.f32 %v64_v17, %v51_v15 }
  0x31   :  { %60 = vadd.xlane.f32.xlu0 %v59_v19  ;;  %v66_v21 = vadd.f32 %v65_v20, %v52_v18 }
  0x35   :  { %67 = vadd.xlane.f32.xlu0 %v66_v21 }
  0xbe   :  { %v61_v22 = vpop.xlane.xlu0 %60 }
  0xbf   :  { %v70_v23 = vmul.f32 0.0013020834, %v61_v22 }
  0xc1   :  { %v377_v24 = vsub.f32 %v41_v0, %v70_v23  ;;  %v379_v25 = vsub.f32 %v42_v1, %v70_v23  ;;  %v381_v26 = vsub.f32 %v43_v2, %v70_v23  ;;  %v383_v28 = vsub.f32 %v44_v3, %v70_v23 }
  0xc2   :  { %v68_v27 = vpop.xlane.xlu0 %67  ;;  %v76_v32 = vsub.f32 %v45_v10, %v70_v23  ;;  %v77_v38 = vsub.f32 %v46_v14, %v70_v23  ;;  %v130_v2 = vshrl.u32 %v129_v62, 7 }
  0xc3   :  { %v71_v29 = vmul.f32 0.0013020834, %v68_v27  ;;  %v84_v30 = vmul.f32 %v377_v24, %v377_v24  ;;  %v85_v31 = vmul.f32 %v379_v25, %v379_v25  ;;  %v86_v33 = vmul.f32 %v381_v26, %v381_v26 }
  0xc4   :  { %v87_v39 = vmul.f32 %v383_v28, %v383_v28  ;;  %v88_v44 = vmul.f32 %v76_v32, %v76_v32  ;;  %v89_v49 = vmul.f32 %v77_v38, %v77_v38  ;;  %v131_v4 = vsub.s32 0, %v130_v2 }
  0xc5   :  { %v96_v34 = vadd.f32 %v85_v31, %v84_v30  ;;  %v391_v35 = vsub.f32 %v47_v5, %v71_v29  ;;  %v393_v36 = vsub.f32 %v48_v6, %v71_v29  ;;  %v395_v37 = vsub.f32 %v49_v7, %v71_v29 }
  0xc6   :  { %v399_v41 = vsub.f32 %v50_v11, %v71_v29  ;;  %v405_v46 = vsub.f32 %v51_v15, %v71_v29  ;;  %v83_v51 = vsub.f32 %v52_v18, %v71_v29  ;;  %v135_v5 = vsub.s32 1, %v130_v2  ;;  %v54_v11 = vld [vmem:[%s442_s2] sm:$0x3f]  ;;  %s329_s2 = smov [#allocation7]  }
  0xc7   :  { %v97_v40 = vadd.f32 %v96_v34, %v86_v33  ;;  %v90_v42 = vmul.f32 %v391_v35, %v391_v35  ;;  %v91_v43 = vmul.f32 %v393_v36, %v393_v36  ;;  %v92_v47 = vmul.f32 %v395_v37, %v395_v37  ;;  %s231_s11 = sshll.u32 %s329_s2, 4  ;;  %s232_s11 = int_to_ptr.vmem [resolvable:$true] %s231_s11 }
  0xc8   :  { %v93_v52 = vmul.f32 %v399_v41, %v399_v41  ;;  %v94_v55 = vmul.f32 %v405_v46, %v405_v46  ;;  %v95_v57 = vmul.f32 %v83_v51, %v83_v51  ;;  %v139_v6 = vsub.s32 2, %v130_v2  ;;  %s297_s12 = scalar_lea.vmem %s232_s11, 1536  ;;  %p302_p3 = scmp.lt.s32.totalorder %s232_s11, %s232_s11 }
  0xc9   :  { %v98_v45 = vadd.f32 %v97_v40, %v87_v39  ;;  %v103_v48 = vadd.f32 %v91_v43, %v90_v42  ;;  %v143_v7 = vsub.s32 3, %v130_v2  ;;  %v147_v9 = vsub.s32 4, %v130_v2  ;;  %p298_p2 = scmp.ne.s32.totalorder %s232_s11, %s297_s12  ;;  %p303_p4 = scmp.lt.s32.totalorder %s297_s12, %s297_s12 }
  0xca   :  { %v151_v10 = vsub.s32 5, %v130_v2  ;;  %v132_v12 = vrot.slane %v53_v8, %v131_v4  ;;  %v136_v13 = vrot.slane %v53_v8, %v135_v5  ;;  %v140_v14 = vrot.slane %v53_v8, %v139_v6 }
  0xcb   :  { %v99_v50 = vadd.f32 %v98_v45, %v88_v44  ;;  %v104_v53 = vadd.f32 %v103_v48, %v92_v47  ;;  %v144_v15 = vrot.slane %v53_v8, %v143_v7  ;;  %v148_v17 = vrot.slane %v53_v8, %v147_v9  ;;  %p304_p5 = por %p303_p4, %p302_p3 }
  0xcc   :  { %v152_v18 = vrot.slane %v53_v8, %v151_v10  ;;  %v175_v19 = vrot.slane %v54_v11, %v131_v4  ;;  %v179_v20 = vrot.slane %v54_v11, %v135_v5  ;;  %v183_v31 = vrot.slane %v54_v11, %v139_v6 }
  0xcd   :  { %v100_v54 = vadd.f32 %v99_v50, %v89_v49  ;;  %v105_v56 = vadd.f32 %v104_v53, %v93_v52  ;;  %v187_v33 = vrot.slane %v54_v11, %v143_v7  ;;  %v191_v40 = vrot.slane %v54_v11, %v147_v9  ;;  %p305_p6 = pnand %p304_p5, %p298_p2 }
  0xce   :  { %v195_v42 = vrot.slane %v54_v11, %v151_v10 }
  0xcf   :  { %101 = vadd.xlane.f32.xlu1 %v100_v54  ;;  %v106_v58 = vadd.f32 %v105_v56, %v94_v55 }
  0xd1   :  { %v107_v59 = vadd.f32 %v106_v58, %v95_v57 }
  0xd3   :  { %108 = vadd.xlane.f32.xlu1 %v107_v59 }
 0x15c   :  { %v102_v60 = vpop.xlane.xlu1 %101 }
 0x15d   :  { %v110_v61 = vmul.f32 0.0013020834, %v102_v60 }
 0x15f   :  { %v112_v63 = vadd.f32 1e-12, %v110_v61 }
 0x160   :  { %v109_v0 = vpop.xlane.xlu1 %108 }
 0x161   :  { %249 = vrsqrt.f32 %v112_v63  ;;  %v111_v1 = vmul.f32 0.0013020834, %v109_v0 }
 0x163   :  { %v113_v3 = vadd.f32 1e-12, %v111_v1 }
 0x165   :  { %251 = vrsqrt.f32 %v113_v3 }
 0x16b   :  { %v250_v16 = vpop.eup %249 }
 0x16c   :  { %v116_v21 = vmul.f32 %v250_v16, %v377_v24  ;;  %v117_v22 = vmul.f32 %v250_v16, %v379_v25  ;;  %v118_v23 = vmul.f32 %v250_v16, %v381_v26  ;;  %v119_v27 = vmul.f32 %v250_v16, %v383_v28 }
 0x16d   :  { %v120_v29 = vmul.f32 %v250_v16, %v76_v32  ;;  %v121_v30 = vmul.f32 %v250_v16, %v77_v38 }
 0x16e   :  { %v159_v34 = vmul.f32 %v132_v12, %v116_v21  ;;  %v160_v39 = vmul.f32 %v136_v13, %v117_v22  ;;  %v161_v44 = vmul.f32 %v140_v14, %v118_v23  ;;  %v162_v45 = vmul.f32 %v144_v15, %v119_v27 }
 0x16f   :  { %v252_v43 = vpop.eup %251  ;;  %v163_v47 = vmul.f32 %v148_v17, %v120_v29  ;;  %v164_v48 = vmul.f32 %v152_v18, %v121_v30 }
 0x170   :  { %v122_v24 = vmul.f32 %v252_v43, %v391_v35  ;;  %v123_v25 = vmul.f32 %v252_v43, %v393_v36  ;;  %v124_v26 = vmul.f32 %v252_v43, %v395_v37  ;;  %v125_v28 = vmul.f32 %v252_v43, %v399_v41 }
 0x171   :  { %v126_v32 = vmul.f32 %v252_v43, %v405_v46  ;;  %v127_v38 = vmul.f32 %v252_v43, %v83_v51  ;;  %v202_v49 = vadd.f32 %v175_v19, %v159_v34  ;;  %v203_v50 = vadd.f32 %v179_v20, %v160_v39 }
 0x172   :  { %v165_v52 = vmul.f32 %v132_v12, %v122_v24  ;;  %v166_v53 = vmul.f32 %v136_v13, %v123_v25  ;;  %v167_v54 = vmul.f32 %v140_v14, %v124_v26  ;;  %v168_v55 = vmul.f32 %v144_v15, %v125_v28 }
 0x173   :  { %v169_v56 = vmul.f32 %v148_v17, %v126_v32  ;;  %v170_v57 = vmul.f32 %v152_v18, %v127_v38  ;;  %v204_v35 = vadd.f32 %v183_v31, %v161_v44  ;;  %v205_v58 = vadd.f32 %v187_v33, %v162_v45  ;;  %214 = vst [vmem:[#allocation7] sm:$0xff] %v202_v49 }
 0x174   :  { %215 = vst [vmem:[#allocation7 + $0x8] sm:$0xff] %v203_v50  ;;  %v206_v36 = vadd.f32 %v191_v40, %v163_v47  ;;  %v207_v37 = vadd.f32 %v195_v42, %v164_v48  ;;  %v208_v41 = vadd.f32 %v175_v19, %v165_v52  ;;  %v209_v59 = vadd.f32 %v179_v20, %v166_v53 }
 0x175   :  { %v210_v46 = vadd.f32 %v183_v31, %v167_v54  ;;  %v211_v51 = vadd.f32 %v187_v33, %v168_v55  ;;  %v212_v60 = vadd.f32 %v191_v40, %v169_v56  ;;  %v213_v61 = vadd.f32 %v195_v42, %v170_v57  ;;  %216 = vst [vmem:[#allocation7 + $0x10] sm:$0xff] %v204_v35 }
 0x176   :  { %217 = vst [vmem:[#allocation7 + $0x18] sm:$0xff] %v205_v58  ;;  %218 = vst [vmem:[#allocation7 + $0x20] sm:$0xff] %v206_v36 }
 0x177   :  { %219 = vst [vmem:[#allocation7 + $0x28] sm:$0xff] %v207_v37  ;;  %220 = vst [vmem:[#allocation7 + $0x30] sm:$0xff] %v208_v41 }
 0x178   :  { %221 = vst [vmem:[#allocation7 + $0x38] sm:$0xff] %v209_v59  ;;  %222 = vst [vmem:[#allocation7 + $0x40] sm:$0xff] %v210_v46 }
 0x179   :  { %223 = vst [vmem:[#allocation7 + $0x48] sm:$0xff] %v211_v51  ;;  %224 = vst [vmem:[#allocation7 + $0x50] sm:$0xff] %v212_v60 }
 0x17a   :  { %225 = vst [vmem:[#allocation7 + $0x58] sm:$0xff] %v213_v61 }
 0x17b   :  { %308 = shalt.err (!%p305_p6)
}
 0x17c   :  { %s309_s15 = scalar_lea.hbm %s443_s3, 1536 }
 0x17d   :  { %p310_p7 = scmp.ne.s32.totalorder %s443_s3, %s309_s15  ;;  %p313_p8 = scmp.lt.u32.totalorder %s309_s15, %s443_s3 }
 0x17f   :  { %p315_p9 = pnand %p313_p8, %p310_p7 }
 0x181   :  { %318 = shalt.err (!%p315_p9)
}
 0x182   :  { %237 = dma.vmem_to_hbm [thread:$0]  %s232_s11, 1536, %s443_s3, [#allocation4], %s326_s22, %s326_s22, %s327_s23  }
 0x183   :  { %323 = dma.done.wait [#allocation4], 1536  }
 0x184   :  { %324 = vsyncadd [#allocation4], 4294965760 }
 0x185   :  { %241 = vsyncpa [#allocation3], 1 }
 0x186   :  { %242 = vsyncpa [#allocation6], 1 }
 0x187   :  { %243 = vsyncpa [#allocation4], 1 }

</bundles_post_ra>
